<compile_context>
chip_gen: v5e
topology: v5e:2x2
jax: 0.10.0
libtpu: 0.0.40
codegen_flags: <defaults>
</compile_context>

<pallas_src>
import jax
import jax.numpy as jnp
from jax.experimental import pallas as pl
from jax.experimental.pallas import tpu as pltpu

_H1 = 128  # fc1 width 64 zero-padded to a full 128-lane vreg
_H2 = 128  # fc2 width 16 zero-padded to a full 128-lane vreg


def mlp_kernel(x_ref, w1_ref, b1_ref, w2_ref, b2_ref, w3t_ref, b3_ref, o_ref):
    # Cast x to bf16 in-kernel (VPU pack, overlapped with the pipeline) instead of
    # materializing a bf16 copy of the whole batch in HBM from the wrapper.
    x = x_ref[...].astype(jnp.bfloat16)

    # fc1 + ReLU: bf16 MXU matmul with f32 accumulation; bias/ReLU in f32 on the VPU.
    h1 = jnp.dot(x, w1_ref[...], preferred_element_type=jnp.float32)
    h1 = jnp.maximum(h1 + b1_ref[...], 0.0)

    # fc2 + ReLU.
    h2 = jnp.dot(h1.astype(jnp.bfloat16), w2_ref[...],
                 preferred_element_type=jnp.float32)
    h2 = jnp.maximum(h2 + b2_ref[...], 0.0)

    # fc3 + Sigmoid, emitted lane-dense: z[0, m] = sum_k w3t[0, k] * h2[m, k].
    # This dot_general form is the known-good lowering from the previous run; even
    # if Mosaic realizes the contraction by relayouting h2, that is ~1 MiB of XLU
    # traffic per 4096-row step -- small next to the x DMA.  (Check with
    # pl.lower_as_mlir when tuning further.)
    z = jax.lax.dot_general(
        w3t_ref[...], h2.astype(jnp.bfloat16),
        dimension_numbers=(((1,), (1,)), ((), ())),
        preferred_element_type=jnp.float32,
    ) + b3_ref[...]
    o_ref[...] = jax.nn.sigmoid(z).astype(o_ref.dtype)  # (1, tile) full-lane store


def _round_up(n, m):
    return pl.cdiv(n, m) * m


def _prepare_params(params):
    """Pad hidden widths to 128, cast weights to bf16, keep fc3 transposed (1, H2)."""
    w1, b1, w2, b2, w3, b3 = params  # (in,64) (1,64) (64,16) (1,16) (16,1) (1,1)
    in_dim = w1.shape[0]
    w1p = jnp.zeros((in_dim, _H1), jnp.bfloat16).at[:, :64].set(w1.astype(jnp.bfloat16))
    b1p = jnp.zeros((1, _H1), jnp.float32).at[:, :64].set(b1.astype(jnp.float32))
    w2p = jnp.zeros((_H1, _H2), jnp.bfloat16).at[:64, :16].set(w2.astype(jnp.bfloat16))
    b2p = jnp.zeros((1, _H2), jnp.float32).at[:, :16].set(b2.astype(jnp.float32))
    # fc3 stored transposed (out, in) so the kernel produces a (1, tile) row.
    w3t = jnp.zeros((1, _H2), jnp.bfloat16).at[:, :16].set(w3.astype(jnp.bfloat16).T)
    b3p = b3.astype(jnp.float32)  # (1, 1)
    return w1p, b1p, w2p, b2p, w3t, b3p


def electricity_model_forward(x, params, *, batch_tile=4096):
    """x: (B, input_dim) f32.  Returns (B, 1) f32 in [0, 1]."""
    w1, b1, w2, b2, w3t, b3 = _prepare_params(params)
    B, input_dim = x.shape

    # Tile selection: derive the step count first, then a 128-aligned tile that
    # minimizes padding.  When an even step count comes for free (v7x has two
    # TensorCores sharing the "parallel" batch axis), use it; never emit a
    # fully-empty trailing step (partial last blocks are fine, empty ones are not).
    batch_tile = max(128, int(batch_tile))
    grid_n = pl.cdiv(B, batch_tile)
    if grid_n > 1 and grid_n % 2 == 1:
        grid_n += 1
    tile = _round_up(pl.cdiv(B, grid_n), 128)
    grid_n = pl.cdiv(B, tile)
    grid = (grid_n,)

    full = lambda i: (0, 0)  # weights/biases: same (only) block every step
    out_row = pl.pallas_call(
        mlp_kernel,
        out_shape=jax.ShapeDtypeStruct((1, B), jnp.float32),
        grid_spec=pl.GridSpec(
            grid=grid,
            in_specs=[
                pl.BlockSpec((tile, input_dim), lambda i: (i, 0)),  # x tile (f32)
                pl.BlockSpec(w1.shape, full),
                pl.BlockSpec(b1.shape, full),
                pl.BlockSpec(w2.shape, full),
                pl.BlockSpec(b2.shape, full),
                pl.BlockSpec(w3t.shape, full),
                pl.BlockSpec(b3.shape, full),
            ],
            out_specs=pl.BlockSpec((1, tile), lambda i: (0, i)),  # lane-dense row
        ),
        compiler_params=pltpu.CompilerParams(
            dimension_semantics=("parallel",),
            vmem_limit_bytes=32 * 1024 * 1024,  # headroom over v5e's 16 MiB default
        ),
    )(x, w1, b1, w2, b2, w3t, b3)
    return out_row.reshape(B, 1)


def init_params(key, input_dim):
    """Deterministic init mimicking nn.Linear's U(-1/sqrt(fan_in), 1/sqrt(fan_in))."""
    dims = [(input_dim, 64), (64, 16), (16, 1)]
    params = []
    for i, (fan_in, fan_out) in enumerate(dims):
        kw, kb = jax.random.split(jax.random.fold_in(key, i))
        bound = 1.0 / (fan_in ** 0.5)
        w = jax.random.uniform(kw, (fan_in, fan_out), jnp.float32, -bound, bound)
        b = jax.random.uniform(kb, (1, fan_out), jnp.float32, -bound, bound)
        params += [w, b]
    return tuple(params)


def ref_forward(x, params):
    w1, b1, w2, b2, w3, b3 = params
    h = jnp.maximum(x @ w1 + b1, 0.0)
    h = jnp.maximum(h @ w2 + b2, 0.0)
    return jax.nn.sigmoid(h @ w3 + b3)


if __name__ == "__main__":
    key = jax.random.PRNGKey(0)
    k_x, k_p, k_x2 = jax.random.split(key, 3)

    input_dim = 32
    params = init_params(k_p, input_dim)

    # Small batch -> single grid step, tile rounded up to 128 (partial block).
    x = jax.random.normal(k_x, (16, input_dim), jnp.float32)
    out = jax.block_until_ready(electricity_model_forward(x, params))
    assert out.shape == (16, 1)
    assert bool(jnp.all((out >= 0.0) & (out <= 1.0)))
    ref = ref_forward(x, params)
    # Tolerance relaxed for bf16 weights/activations (f32 accumulation in-kernel).
    assert bool(jnp.allclose(out, ref, atol=2e-2)), float(jnp.max(jnp.abs(out - ref)))

    # Ragged batch, default tile: single step, tile=640, no wrapper pad / no bf16 copy.
    x2 = jax.random.normal(k_x2, (600, input_dim), jnp.float32)
    out2 = jax.block_until_ready(electricity_model_forward(x2, params))
    assert out2.shape == (600, 1)
    assert bool(jnp.all((out2 >= 0.0) & (out2 <= 1.0)))
    ref2 = ref_forward(x2, params)
    assert bool(jnp.allclose(out2, ref2, atol=2e-2)), float(jnp.max(jnp.abs(out2 - ref2)))

    # Ragged batch, small tile override: exercises the multi-step grid with a
    # partial (masked) last block and the megacore-parallel batch axis.
    out3 = jax.block_until_ready(
        electricity_model_forward(x2, params, batch_tile=256))
    assert out3.shape == (600, 1)
    assert bool(jnp.allclose(out3, ref2, atol=2e-2)), float(jnp.max(jnp.abs(out3 - ref2)))

    print("KERNEL_OK")
</pallas_src>

<mosaic_0001>
module attributes {stable_mosaic.version = 11 : i64} {
  func.func @mlp_kernel(%arg0: i32, %arg1: memref<128x32xf32, #tpu.memory_space<vmem>>, %arg2: memref<32x128xbf16, #tpu.memory_space<vmem>>, %arg3: memref<1x128xf32, #tpu.memory_space<vmem>>, %arg4: memref<128x128xbf16, #tpu.memory_space<vmem>>, %arg5: memref<1x128xf32, #tpu.memory_space<vmem>>, %arg6: memref<1x128xbf16, #tpu.memory_space<vmem>>, %arg7: memref<1x1xf32, #tpu.memory_space<vmem>>, %arg8: memref<1x128xf32, #tpu.memory_space<vmem>>) attributes {dimension_semantics = [#tpu.dimension_semantics<parallel>], iteration_bounds = array<i64: 1>, scalar_prefetch = 0 : i64, scratch_operands = 0 : i64, tpu.core_type = #tpu.core_type<tc>, window_params = [{transform_indices = @transform_0, window_bounds = array<i64: 128, 32>}, {pipeline_mode = #tpu.pipeline_mode<synchronous>, transform_indices = @transform_1, window_bounds = array<i64: 32, 128>}, {pipeline_mode = #tpu.pipeline_mode<synchronous>, transform_indices = @transform_2, window_bounds = array<i64: 1, 128>}, {pipeline_mode = #tpu.pipeline_mode<synchronous>, transform_indices = @transform_3, window_bounds = array<i64: 128, 128>}, {pipeline_mode = #tpu.pipeline_mode<synchronous>, transform_indices = @transform_4, window_bounds = array<i64: 1, 128>}, {pipeline_mode = #tpu.pipeline_mode<synchronous>, transform_indices = @transform_5, window_bounds = array<i64: 1, 128>}, {pipeline_mode = #tpu.pipeline_mode<synchronous>, transform_indices = @transform_6, window_bounds = array<i64: 1, 1>}, {transform_indices = @transform_7, window_bounds = array<i64: 1, 128>}]} {
    %c0 = arith.constant 0 : index
    %c0_0 = arith.constant 0 : index
    %0 = vector.load %arg1[%c0, %c0_0] : memref<128x32xf32, #tpu.memory_space<vmem>>, vector<128x32xf32>
    %1 = arith.truncf %0 : vector<128x32xf32> to vector<128x32xbf16>
    %c0_1 = arith.constant 0 : index
    %c0_2 = arith.constant 0 : index
    %2 = vector.load %arg2[%c0_1, %c0_2] : memref<32x128xbf16, #tpu.memory_space<vmem>>, vector<32x128xbf16>
    %cst = arith.constant dense<0.000000e+00> : vector<128x128xf32>
    %3 = tpu.matmul %1, %2, %cst {dimension_numbers = #tpu.dot_dimension_numbers<[1], [0], [0], [1], [0, 0, 1, 1], [], []>} : vector<128x32xbf16>, vector<32x128xbf16>, vector<128x128xf32> -> vector<128x128xf32>
    %c0_3 = arith.constant 0 : index
    %c0_4 = arith.constant 0 : index
    %4 = vector.load %arg3[%c0_3, %c0_4] : memref<1x128xf32, #tpu.memory_space<vmem>>, vector<1x128xf32>
    %5 = vector.broadcast %4 : vector<1x128xf32> to vector<128x128xf32>
    %6 = arith.addf %3, %5 : vector<128x128xf32>
    %cst_5 = arith.constant 0.000000e+00 : f32
    %7 = vector.broadcast %cst_5 : f32 to vector<128x128xf32>
    %8 = arith.maximumf %6, %7 : vector<128x128xf32>
    %9 = arith.truncf %8 : vector<128x128xf32> to vector<128x128xbf16>
    %c0_6 = arith.constant 0 : index
    %c0_7 = arith.constant 0 : index
    %10 = vector.load %arg4[%c0_6, %c0_7] : memref<128x128xbf16, #tpu.memory_space<vmem>>, vector<128x128xbf16>
    %cst_8 = arith.constant dense<0.000000e+00> : vector<128x128xf32>
    %11 = tpu.matmul %9, %10, %cst_8 {dimension_numbers = #tpu.dot_dimension_numbers<[1], [0], [0], [1], [0, 0, 1, 1], [], []>} : vector<128x128xbf16>, vector<128x128xbf16>, vector<128x128xf32> -> vector<128x128xf32>
    %c0_9 = arith.constant 0 : index
    %c0_10 = arith.constant 0 : index
    %12 = vector.load %arg5[%c0_9, %c0_10] : memref<1x128xf32, #tpu.memory_space<vmem>>, vector<1x128xf32>
    %13 = vector.broadcast %12 : vector<1x128xf32> to vector<128x128xf32>
    %14 = arith.addf %11, %13 : vector<128x128xf32>
    %cst_11 = arith.constant 0.000000e+00 : f32
    %15 = vector.broadcast %cst_11 : f32 to vector<128x128xf32>
    %16 = arith.maximumf %14, %15 : vector<128x128xf32>
    %c0_12 = arith.constant 0 : index
    %c0_13 = arith.constant 0 : index
    %17 = vector.load %arg6[%c0_12, %c0_13] : memref<1x128xbf16, #tpu.memory_space<vmem>>, vector<1x128xbf16>
    %18 = arith.truncf %16 : vector<128x128xf32> to vector<128x128xbf16>
    %cst_14 = arith.constant dense<0.000000e+00> : vector<1x128xf32>
    %19 = tpu.matmul %17, %18, %cst_14 {dimension_numbers = #tpu.dot_dimension_numbers<[1], [1], [0], [0], [0, 0, 1, 0], [], []>} : vector<1x128xbf16>, vector<128x128xbf16>, vector<1x128xf32> -> vector<1x128xf32>
    %c0_15 = arith.constant 0 : index
    %c0_16 = arith.constant 0 : index
    %20 = vector.load %arg7[%c0_15, %c0_16] : memref<1x1xf32, #tpu.memory_space<vmem>>, vector<1x1xf32>
    %21 = vector.broadcast %20 : vector<1x1xf32> to vector<1x128xf32>
    %22 = arith.addf %19, %21 : vector<1x128xf32>
    %23 = arith.negf %22 : vector<1x128xf32>
    %24 = math.exp %23 : vector<1x128xf32>
    %cst_17 = arith.constant 1.000000e+00 : f32
    %25 = vector.broadcast %cst_17 : f32 to vector<1x128xf32>
    %26 = arith.addf %25, %24 : vector<1x128xf32>
    %27 = arith.divf %25, %26 : vector<1x128xf32>
    %c0_18 = arith.constant 0 : index
    %c0_19 = arith.constant 0 : index
    %28 = vector.load %arg8[%c0_18, %c0_19] : memref<1x128xf32, #tpu.memory_space<vmem>>, vector<1x128xf32>
    tpu.vector_store %arg8[%c0_18, %c0_19], %27 {strides = array<i32>} : memref<1x128xf32, #tpu.memory_space<vmem>>, vector<1x128xf32>,
    return
  }
  func.func @transform_0(%arg0: i32) -> (i32, i32) {
    %c0_i32 = arith.constant 0 : i32
    %c0_i32_0 = arith.constant 0 : i32
    return %arg0, %c0_i32 : i32, i32
  }
  func.func @transform_1(%arg0: i32) -> (i32, i32) {
    %c0_i32 = arith.constant 0 : i32
    %c0_i32_0 = arith.constant 0 : i32
    %c0_i32_1 = arith.constant 0 : i32
    return %c0_i32, %c0_i32_0 : i32, i32
  }
  func.func @transform_2(%arg0: i32) -> (i32, i32) {
    %c0_i32 = arith.constant 0 : i32
    %c0_i32_0 = arith.constant 0 : i32
    %c0_i32_1 = arith.constant 0 : i32
    return %c0_i32, %c0_i32_0 : i32, i32
  }
  func.func @transform_3(%arg0: i32) -> (i32, i32) {
    %c0_i32 = arith.constant 0 : i32
    %c0_i32_0 = arith.constant 0 : i32
    %c0_i32_1 = arith.constant 0 : i32
    return %c0_i32, %c0_i32_0 : i32, i32
  }
  func.func @transform_4(%arg0: i32) -> (i32, i32) {
    %c0_i32 = arith.constant 0 : i32
    %c0_i32_0 = arith.constant 0 : i32
    %c0_i32_1 = arith.constant 0 : i32
    return %c0_i32, %c0_i32_0 : i32, i32
  }
  func.func @transform_5(%arg0: i32) -> (i32, i32) {
    %c0_i32 = arith.constant 0 : i32
    %c0_i32_0 = arith.constant 0 : i32
    %c0_i32_1 = arith.constant 0 : i32
    return %c0_i32, %c0_i32_0 : i32, i32
  }
  func.func @transform_6(%arg0: i32) -> (i32, i32) {
    %c0_i32 = arith.constant 0 : i32
    %c0_i32_0 = arith.constant 0 : i32
    %c0_i32_1 = arith.constant 0 : i32
    return %c0_i32, %c0_i32_0 : i32, i32
  }
  func.func @transform_7(%arg0: i32) -> (i32, i32) {
    %c0_i32 = arith.constant 0 : i32
    %c0_i32_0 = arith.constant 0 : i32
    return %c0_i32, %arg0 : i32, i32
  }
}

</mosaic_0001>

<bundles_post_ra>
// kernel: tpu_custom_call.1
= control target key start
LH: loop header
LB: loop body
LE: loop exit
PB: predicated region body
PF: predicated region fallthrough
CT: control target
= control target key end

     0   :  { %s685_s0 = inlined_call_operand.hbm [shape: f32[16,32], index: 0, kind: input, shape index: {}]   ;;  %s686_s1 = inlined_call_operand.hbm [shape: bf16[32,128], index: 1, kind: input, shape index: {}]   ;;  %s687_s2 = inlined_call_operand.vmem [shape: f32[1,128], index: 2, kind: input, shape index: {}]   ;;  %s688_s3 = inlined_call_operand.hbm [shape: bf16[128,128], index: 3, kind: input, shape index: {}]   ;;  %s689_s4 = inlined_call_operand.vmem [shape: f32[1,128], index: 4, kind: input, shape index: {}]   ;;  %s690_s5 = inlined_call_operand.vmem [shape: bf16[1,128], index: 5, kind: input, shape index: {}]   ;;  %s691_s6 = inlined_call_operand.<no memory space> [shape: f32[1,1], index: 6, kind: input, shape index: {}]   ;;  %s692_s7 = inlined_call_operand.hbm [shape: f32[1,16], index: 7, kind: output, shape index: {}]  }
   0x1   :  { %v12_v0 = vstv %s691_s6 }
   0x2   :  { %13 = vst [vmem:[#allocation2] sm:$0x1] %v12_v0 }
   0x3   :  { %14 = vsyncpa [#allocation4], 0 }
   0x4   :  { %15 = vsyncpa [#allocation7], 0 }
   0x5   :  { %16 = vsyncpa [#allocation5], 0  ;;  %s34_s28 = sshll.u32 %s686_s1, 4  ;;  %s35_s28 = int_to_ptr.hbm [resolvable:$true] %s34_s28 }
   0x6   :  { %20 = vsyncadd [#allocation4], 1792  ;;  %s604_s29 = smov [#allocation6]   ;;  %s21_s10 = sshll.u32 %s685_s0, 4  ;;  %s22_s10 = int_to_ptr.hbm [resolvable:$true] %s21_s10 }
   0x7   :  { %s36_s30 = sshll.u32 %s604_s29, 4  ;;  %s605_s11 = smov 64   ;;  %s37_s30 = int_to_ptr.vmem [resolvable:$true] %s36_s30 }
   0x8   :  { %s606_s12 = smov 4   ;;  %s607_s6 = smov [#allocation3]  }
   0x9   :  { %42 = dma.hbm_to_vmem [thread:$0]  %s35_s28, 256, %s37_s30, [#allocation7], %s605_s11, %s605_s11, %s606_s12  }
   0xa   :  { %s23_s13 = sshll.u32 %s607_s6, 4  ;;  %s608_s14 = smov 128   ;;  %s24_s13 = int_to_ptr.vmem [resolvable:$true] %s23_s13 }
   0xb   :  { %s609_s15 = smov 8   ;;  %s49_s17 = sshll.u32 %s688_s3, 4  ;;  %s50_s17 = int_to_ptr.hbm [resolvable:$true] %s49_s17 }
   0xc   :  { %29 = dma.hbm_to_vmem [thread:$0]  %s22_s10, 256, %s24_s13, [#allocation4], %s608_s14, %s608_s14, %s609_s15  }
   0xd   :  { %s610_s18 = smov [#allocation8]  }
   0xe   :  { %s51_s19 = sshll.u32 %s610_s18, 4  ;;  %s52_s19 = int_to_ptr.vmem [resolvable:$true] %s51_s19 }
   0xf   :  { %57 = dma.hbm_to_vmem [thread:$0]  %s50_s17, 1024, %s52_s19, [#allocation7], %s605_s11, %s605_s11, %s606_s12  }
  0x10   :  { %598 = dma.done.wait [#allocation4], 2048  }
  0x11   :  { %599 = vsyncadd [#allocation4], 4294965248 }
  0x12   :  { %600 = dma.done.wait [#allocation7], 1280  }
  0x13   :  { %601 = vsyncadd [#allocation7], 4294966016  ;;  %v469_v1 = vld [vmem:[#allocation6 + $0x8] sm:$0xff]  ;;  %v468_v2 = vld [vmem:[#allocation6] sm:$0xff]  ;;  %vm121_vm0 = vcmask 261120   ;;  %s612_s22 = smov [#allocation9]  }
  0x14   :  { %152 = vmatpush.bf16.msra.mxu0 %v469_v1  ;;  %v77_v3 = vld [vmem:[#allocation3] sm:$0xff]  ;;  %v78_v4 = vld [vmem:[#allocation3 + $0x8] sm:$0xff]  ;;  %v79_v6 = vld [vmem:[#allocation3 + $0x10] sm:$0xff]  ;;  %s408_s25 = sshll.u32 %s692_s7, 4  ;;  %s409_s25 = int_to_ptr.hbm [resolvable:$true] %s408_s25 }
  0x15   :  { %v93_v5 = vpack.c.bf16 %v78_v4, %v77_v3  ;;  %v80_v7 = vld [vmem:[#allocation3 + $0x18] sm:$0xff]  ;;  %v81_v9 = vld [vmem:[#allocation3 + $0x20] sm:$0xff]  ;;  %v82_v10 = vld [vmem:[#allocation3 + $0x28] sm:$0xff] }
  0x16   :  { %v94_v8 = vpack.c.bf16 %v80_v7, %v79_v6  ;;  %v95_v11 = vpack.c.bf16 %v82_v10, %v81_v9  ;;  %v83_v12 = vld [vmem:[#allocation3 + $0x30] sm:$0xff]  ;;  %v84_v13 = vld [vmem:[#allocation3 + $0x38] sm:$0xff]  ;;  %v85_v15 = vld [vmem:[#allocation3 + $0x40] sm:$0xff] }
  0x17   :  { %v96_v14 = vpack.c.bf16 %v84_v13, %v83_v12  ;;  %v86_v16 = vld [vmem:[#allocation3 + $0x48] sm:$0xff]  ;;  %v87_v19 = vld [vmem:[#allocation3 + $0x50] sm:$0xff]  ;;  %v88_v20 = vld [vmem:[#allocation3 + $0x58] sm:$0xff] }
  0x18   :  { %153 = vmatpush.bf16.msra.mxu0 %v468_v2  ;;  %v97_v17 = vpack.c.bf16 %v86_v16, %v85_v15  ;;  %v477_v18 = vld [vmem:[#allocation8 + $0x38] sm:$0xff]  ;;  %v98_v21 = vpack.c.bf16 %v88_v20, %v87_v19  ;;  %v476_v22 = vld [vmem:[#allocation8 + $0x30] sm:$0xff]  ;;  %v475_v23 = vld [vmem:[#allocation8 + $0x28] sm:$0xff] }
  0x19   :  { %287 = vmatpush.bf16.msra.mxu1 %v477_v18  ;;  %478 = vmatpush.bf16.msra.mxu3 %v477_v18  ;;  %v474_v24 = vld [vmem:[#allocation8 + $0x20] sm:$0xff]  ;;  %v89_v25 = vld [vmem:[#allocation3 + $0x60] sm:$0xff]  ;;  %v90_v26 = vld [vmem:[#allocation3 + $0x68] sm:$0xff] }
  0x1a   :  { %v473_v27 = vld [vmem:[#allocation8 + $0x18] sm:$0xff]  ;;  %v99_v28 = vpack.c.bf16 %v90_v26, %v89_v25  ;;  %v472_v29 = vld [vmem:[#allocation8 + $0x10] sm:$0xff]  ;;  %v471_v30 = vld [vmem:[#allocation8 + $0x8] sm:$0xff] }
  0x1b   :  { %427 = vmatmul.msk.bf16.vlgmr.msra.gmra.mxu0 %vm121_vm0, %v93_v5  ;;  %v470_v31 = vld [vmem:[#allocation8] sm:$0xff]  ;;  %v92_v33 = vld [vmem:[#allocation3 + $0x78] sm:$0xff] }
  0x1c   :  { %v91_v32 = vld [vmem:[#allocation3 + $0x70] sm:$0xff]  ;;  %v496_v36 = vld [vmem:[%s687_s2] ss:$0 sm:$0xff] }
  0x1d   :  { %288 = vmatpush.bf16.msra.mxu1 %v476_v22  ;;  %479 = vmatpush.bf16.msra.mxu3 %v476_v22  ;;  %v100_v34 = vpack.c.bf16 %v92_v33, %v91_v32 }
  0x21   :  { %289 = vmatpush.bf16.msra.mxu1 %v475_v23  ;;  %480 = vmatpush.bf16.msra.mxu3 %v475_v23 }
  0x25   :  { %290 = vmatpush.bf16.msra.mxu1 %v474_v24  ;;  %481 = vmatpush.bf16.msra.mxu3 %v474_v24 }
  0x29   :  { %291 = vmatpush.bf16.msra.mxu1 %v473_v27  ;;  %482 = vmatpush.bf16.msra.mxu3 %v473_v27 }
  0x2b   :  { %428 = vmatmul.msk.bf16.gmra.mxu0 %vm121_vm0, %v94_v8 }
  0x2d   :  { %292 = vmatpush.bf16.msra.mxu1 %v472_v29  ;;  %483 = vmatpush.bf16.msra.mxu3 %v472_v29  ;;  %v497_v29 = vld [vmem:[%s689_s4] ss:$0 sm:$0xff] }
  0x31   :  { %293 = vmatpush.bf16.msra.mxu1 %v471_v30  ;;  %484 = vmatpush.bf16.msra.mxu3 %v471_v30 }
  0x35   :  { %294 = vmatpush.bf16.msra.mxu1 %v470_v31  ;;  %485 = vmatpush.bf16.msra.mxu3 %v470_v31 }
  0x3b   :  { %429 = vmatmul.msk.bf16.gmra.mxu0 %vm121_vm0, %v95_v11 }
  0x4b   :  { %430 = vmatmul.msk.bf16.gmra.mxu0 %vm121_vm0, %v96_v14 }
  0x5b   :  { %431 = vmatmul.msk.bf16.gmra.mxu0 %vm121_vm0, %v97_v17 }
  0x6b   :  { %432 = vmatmul.msk.bf16.gmra.mxu0 %vm121_vm0, %v98_v21 }
  0x7b   :  { %433 = vmatmul.msk.bf16.gmra.mxu0 %vm121_vm0, %v99_v28 }
  0x8b   :  { %434 = vmatmul.msk.bf16.gmra.mxu0 %vm121_vm0, %v100_v34 }
  0x98   :  { %v155_v35 = vpop.f32.mrf.mxu0 }
  0x99   :  { %v156_v37 = vadd.f32 %v496_v36, %v155_v35 }
  0x9b   :  { %v195_v40 = vmax.f32 %v156_v37, 0.0 }
  0xa0   :  { %v157_v38 = vpop.f32.mrf.mxu0 }
  0xa1   :  { %v158_v39 = vadd.f32 %v496_v36, %v157_v38 }
  0xa3   :  { %v196_v41 = vmax.f32 %v158_v39, 0.0 }
  0xa5   :  { %v211_v42 = vpack.c.bf16 %v196_v41, %v195_v40 }
  0xa7   :  { %295 = vmatmul.bf16.vlgmr.msra.gmra.mxu1 %v211_v42 }
  0xa8   :  { %v160_v43 = vpop.f32.mrf.mxu0 }
  0xa9   :  { %v161_v44 = vadd.f32 %v496_v36, %v160_v43 }
  0xab   :  { %v197_v47 = vmax.f32 %v161_v44, 0.0 }
  0xb0   :  { %v162_v45 = vpop.f32.mrf.mxu0 }
  0xb1   :  { %v163_v46 = vadd.f32 %v496_v36, %v162_v45 }
  0xb3   :  { %v198_v48 = vmax.f32 %v163_v46, 0.0 }
  0xb5   :  { %v212_v49 = vpack.c.bf16 %v198_v48, %v197_v47 }
  0xb7   :  { %300 = vmatmul.bf16.gmra.mxu1 %v212_v49 }
  0xb8   :  { %v165_v50 = vpop.f32.mrf.mxu0 }
  0xb9   :  { %v166_v51 = vadd.f32 %v496_v36, %v165_v50 }
  0xbb   :  { %v199_v54 = vmax.f32 %v166_v51, 0.0 }
  0xc0   :  { %v167_v52 = vpop.f32.mrf.mxu0 }
  0xc1   :  { %v168_v53 = vadd.f32 %v496_v36, %v167_v52 }
  0xc3   :  { %v200_v55 = vmax.f32 %v168_v53, 0.0 }
  0xc5   :  { %v213_v56 = vpack.c.bf16 %v200_v55, %v199_v54 }
  0xc7   :  { %305 = vmatmul.bf16.gmra.mxu1 %v213_v56 }
  0xc8   :  { %v170_v57 = vpop.f32.mrf.mxu0 }
  0xc9   :  { %v171_v58 = vadd.f32 %v496_v36, %v170_v57 }
  0xcb   :  { %v201_v61 = vmax.f32 %v171_v58, 0.0 }
  0xd0   :  { %v172_v59 = vpop.f32.mrf.mxu0 }
  0xd1   :  { %v173_v60 = vadd.f32 %v496_v36, %v172_v59 }
  0xd3   :  { %v202_v62 = vmax.f32 %v173_v60, 0.0 }
  0xd5   :  { %v214_v63 = vpack.c.bf16 %v202_v62, %v201_v61 }
  0xd7   :  { %310 = vmatmul.bf16.gmra.mxu1 %v214_v63 }
  0xd8   :  { %v175_v0 = vpop.f32.mrf.mxu0 }
  0xd9   :  { %v176_v1 = vadd.f32 %v496_v36, %v175_v0 }
  0xdb   :  { %v203_v4 = vmax.f32 %v176_v1, 0.0 }
  0xe0   :  { %v177_v2 = vpop.f32.mrf.mxu0 }
  0xe1   :  { %v178_v3 = vadd.f32 %v496_v36, %v177_v2 }
  0xe3   :  { %v204_v5 = vmax.f32 %v178_v3, 0.0 }
  0xe5   :  { %v215_v6 = vpack.c.bf16 %v204_v5, %v203_v4 }
  0xe7   :  { %315 = vmatmul.bf16.gmra.mxu1 %v215_v6 }
  0xe8   :  { %v180_v7 = vpop.f32.mrf.mxu0 }
  0xe9   :  { %v181_v8 = vadd.f32 %v496_v36, %v180_v7 }
  0xeb   :  { %v205_v11 = vmax.f32 %v181_v8, 0.0 }
  0xf0   :  { %v182_v9 = vpop.f32.mrf.mxu0 }
  0xf1   :  { %v183_v10 = vadd.f32 %v496_v36, %v182_v9 }
  0xf3   :  { %v206_v12 = vmax.f32 %v183_v10, 0.0 }
  0xf5   :  { %v216_v13 = vpack.c.bf16 %v206_v12, %v205_v11 }
  0xf7   :  { %320 = vmatmul.bf16.vlgmr.msra.gmra.mxu3 %v216_v13 }
  0xf8   :  { %v185_v14 = vpop.f32.mrf.mxu0 }
  0xf9   :  { %v186_v15 = vadd.f32 %v496_v36, %v185_v14 }
  0xfb   :  { %v207_v18 = vmax.f32 %v186_v15, 0.0 }
 0x100   :  { %v187_v16 = vpop.f32.mrf.mxu0 }
 0x101   :  { %v188_v17 = vadd.f32 %v496_v36, %v187_v16 }
 0x103   :  { %v208_v19 = vmax.f32 %v188_v17, 0.0  ;;  %v361_v17 = vld [vmem:[#allocation2] sm:$0x1] }
 0x105   :  { %v217_v20 = vpack.c.bf16 %v208_v19, %v207_v18  ;;  %v611_v19 = vmov 0  }
 0x106   :  { %495 = vset.pattern.permute.xlu0 %v611_v19 }
 0x107   :  { %325 = vmatmul.bf16.gmra.mxu3 %v217_v20  ;;  %364 = vperm.xlu0 %495, %v361_v17  }
 0x108   :  { %v190_v21 = vpop.f32.mrf.mxu0 }
 0x109   :  { %v191_v22 = vadd.f32 %v496_v36, %v190_v21 }
 0x10b   :  { %v209_v25 = vmax.f32 %v191_v22, 0.0 }
 0x110   :  { %v192_v23 = vpop.f32.mrf.mxu0 }
 0x111   :  { %v193_v24 = vadd.f32 %v496_v36, %v192_v23  ;;  %v352_v23 = vld [vmem:[%s690_s5] sm:$0x1]  ;;  %s406_s5 = sshll.u32 %s612_s22, 4  ;;  %s407_s5 = int_to_ptr.vmem [resolvable:$true] %s406_s5 }
 0x113   :  { %v210_v26 = vmax.f32 %v193_v24, 0.0 }
 0x115   :  { %v218_v27 = vpack.c.bf16 %v210_v26, %v209_v25 }
 0x117   :  { %330 = vmatmul.bf16.gmra.mxu3 %v218_v27 }
 0x124   :  { %v296_v28 = vpop.f32.mrf.mxu1 }
 0x125   :  { %v297_v30 = vadd.f32 %v497_v29, %v296_v28 }
 0x127   :  { %v336_v33 = vmax.f32 %v297_v30, 0.0 }
 0x12c   :  { %v298_v31 = vpop.f32.mrf.mxu1 }
 0x12d   :  { %v299_v32 = vadd.f32 %v497_v29, %v298_v31 }
 0x12f   :  { %v337_v34 = vmax.f32 %v299_v32, 0.0 }
 0x131   :  { %v353_v35 = vpack.c.bf16 %v337_v34, %v336_v33 }
 0x134   :  { %v301_v37 = vpop.f32.mrf.mxu1 }
 0x135   :  { %v302_v38 = vadd.f32 %v497_v29, %v301_v37 }
 0x137   :  { %v338_v36 = vmax.f32 %v302_v38, 0.0 }
 0x13c   :  { %v303_v39 = vpop.f32.mrf.mxu1 }
 0x13d   :  { %v304_v40 = vadd.f32 %v497_v29, %v303_v39 }
 0x13f   :  { %v339_v41 = vmax.f32 %v304_v40, 0.0 }
 0x141   :  { %v354_v42 = vpack.c.bf16 %v339_v41, %v338_v36 }
 0x144   :  { %v306_v44 = vpop.f32.mrf.mxu1 }
 0x145   :  { %v307_v18 = vadd.f32 %v497_v29, %v306_v44 }
 0x147   :  { %v340_v21 = vmax.f32 %v307_v18, 0.0 }
 0x14c   :  { %v308_v47 = vpop.f32.mrf.mxu1 }
 0x14d   :  { %v309_v15 = vadd.f32 %v497_v29, %v308_v47 }
 0x14f   :  { %v341_v20 = vmax.f32 %v309_v15, 0.0 }
 0x151   :  { %v355_v22 = vpack.c.bf16 %v341_v20, %v340_v21 }
 0x154   :  { %v311_v49 = vpop.f32.mrf.mxu1 }
 0x155   :  { %v312_v12 = vadd.f32 %v497_v29, %v311_v49 }
 0x157   :  { %v342_v14 = vmax.f32 %v312_v12, 0.0 }
 0x15c   :  { %v313_v51 = vpop.f32.mrf.mxu1 }
 0x15d   :  { %v314_v10 = vadd.f32 %v497_v29, %v313_v51 }
 0x15f   :  { %v343_v13 = vmax.f32 %v314_v10, 0.0 }
 0x161   :  { %v356_v16 = vpack.c.bf16 %v343_v13, %v342_v14 }
 0x164   :  { %v316_v60 = vpop.f32.mrf.mxu1 }
 0x165   :  { %v317_v7 = vadd.f32 %v497_v29, %v316_v60 }
 0x167   :  { %v344_v9 = vmax.f32 %v317_v7, 0.0 }
 0x16c   :  { %v318_v3 = vpop.f32.mrf.mxu1 }
 0x16d   :  { %v319_v5 = vadd.f32 %v497_v29, %v318_v3 }
 0x16f   :  { %v345_v8 = vmax.f32 %v319_v5, 0.0 }
 0x171   :  { %v357_v11 = vpack.c.bf16 %v345_v8, %v344_v9 }
 0x179   :  { %v365_v24 = vpop.permute.xlu0 %364 }
 0x17a   :  { %v321_v43 = vpop.f32.mrf.mxu3  ;;  %v367_v25 = vperm.slane %v365_v24, 0 }
 0x17b   :  { %v322_v1 = vadd.f32 %v497_v29, %v321_v43 }
 0x17d   :  { %v346_v4 = vmax.f32 %v322_v1, 0.0 }
 0x182   :  { %v323_v45 = vpop.f32.mrf.mxu3 }
 0x183   :  { %v324_v63 = vadd.f32 %v497_v29, %v323_v45 }
 0x185   :  { %v347_v2 = vmax.f32 %v324_v63, 0.0 }
 0x187   :  { %v358_v6 = vpack.c.bf16 %v347_v2, %v346_v4 }
 0x18a   :  { %v326_v46 = vpop.f32.mrf.mxu3 }
 0x18b   :  { %v327_v59 = vadd.f32 %v497_v29, %v326_v46 }
 0x18d   :  { %v348_v62 = vmax.f32 %v327_v59, 0.0 }
 0x192   :  { %v328_v48 = vpop.f32.mrf.mxu3 }
 0x193   :  { %v329_v57 = vadd.f32 %v497_v29, %v328_v48 }
 0x195   :  { %v349_v61 = vmax.f32 %v329_v57, 0.0 }
 0x197   :  { %v359_v0 = vpack.c.bf16 %v349_v61, %v348_v62 }
 0x19a   :  { %v331_v50 = vpop.f32.mrf.mxu3 }
 0x19b   :  { %v332_v52 = vadd.f32 %v497_v29, %v331_v50 }
 0x19d   :  { %v350_v55 = vmax.f32 %v332_v52, 0.0 }
 0x1a2   :  { %v333_v53 = vpop.f32.mrf.mxu3 }
 0x1a3   :  { %v334_v54 = vadd.f32 %v497_v29, %v333_v53 }
 0x1a5   :  { %v351_v56 = vmax.f32 %v334_v54, 0.0 }
 0x1a7   :  { %v360_v58 = vpack.c.bf16 %v351_v56, %v350_v55 }
 0x1a9   :  { %368 = vmatpush.bf16.xpose.msra.mxu2 %v360_v58 }
 0x1b1   :  { %369 = vmatpush.bf16.xpose.msra.mxu2 %v359_v0 }
 0x1b9   :  { %370 = vmatpush.bf16.xpose.msra.mxu2 %v358_v6 }
 0x1c1   :  { %371 = vmatpush.bf16.xpose.msra.mxu2 %v357_v11 }
 0x1c9   :  { %372 = vmatpush.bf16.xpose.msra.mxu2 %v356_v16 }
 0x1d1   :  { %373 = vmatpush.bf16.xpose.msra.mxu2 %v355_v22 }
 0x1d9   :  { %374 = vmatpush.bf16.xpose.msra.mxu2 %v354_v42 }
 0x1e1   :  { %375 = vmatpush.bf16.xpose.msra.mxu2 %v353_v35 }
 0x1e8   :  { %376 = vmatmul.bf16.vlgmr.msra.gmra.mxu2 %v352_v23 }
 0x26b   :  { %v377_v26 = vpop.f32.mrf.mxu2 }
 0x26c   :  { %v378_v27 = vadd.f32 %v377_v26, %v367_v25 }
 0x26e   :  { %v467_v28 = vmul.f32 -1.442695, %v378_v27 }
 0x270   :  { %498 = vpow2.f32 %v467_v28 }
 0x273   :  { %v379_v29 = vpop.f32.mrf.mxu2 }
 0x276   :  { %v499_v30 = vpop.eup %498 }
 0x277   :  { %v384_v31 = vadd.f32 1.0, %v499_v30 }
 0x279   :  { %500 = vrcp.f32 %v384_v31  ;;  %v396_v37 = vand.u32 2147483648, %v384_v31  ;;  %v394_v38 = vand.u32 2147483647, %v384_v31  ;;  %vm390_vm2 = vweird.f32 %v384_v31 }
 0x27b   :  { %v397_v40 = vor.u32 1.1754944e-38, %v396_v37  ;;  %vm395_vm4 = vcmp.eq.f32.partialorder %v394_v38, 8.507059e+37 }
 0x27f   :  { %v501_v32 = vpop.eup %500 }
 0x280   :  { %v386_v33 = vmul.f32 %v501_v32, %v384_v31  ;;  %vm391_vm1 = vweird.f32 %v501_v32 }
 0x281   :  { %vm392_vm3 = vmor %vm390_vm2, %vm391_vm1 }
 0x282   :  { %v387_v34 = vsub.f32 1.0, %v386_v33 }
 0x284   :  { %v388_v35 = vmul.f32 %v501_v32, %v387_v34 }
 0x286   :  { %v389_v39 = vadd.f32 %v501_v32, %v388_v35 }
 0x288   :  { %v393_v36 = vsel %vm392_vm3, %v501_v32, %v389_v39 }
 0x289   :  { %v398_v41 = vsel %vm395_vm4, %v397_v40, %v393_v36 }
 0x28a   :  { %400 = vst [vmem:[#allocation9] sm:$0x1] %v398_v41 }
 0x28b   :  { %411 = dma.vmem_to_hbm [thread:$0]  %s407_s5, 16, %s409_s25, [#allocation5]  }
 0x28c   :  { %602 = dma.done.wait [#allocation5], 16  }
 0x28d   :  { %603 = vsyncadd [#allocation5], 4294967280 }
 0x28e   :  { %416 = vsyncpa [#allocation4], 1 }
 0x28f   :  { %417 = vsyncpa [#allocation7], 1 }
 0x290   :  { %418 = vsyncpa [#allocation5], 1 }

</bundles_post_ra>
